<compile_context>
chip_gen: v6e
topology: v6e:2x2x1
jax: 0.10.0
libtpu: 0.0.40
codegen_flags: <defaults>
</compile_context>

<pallas_src>
import numpy as np
import jax
import jax.numpy as jnp
from jax.experimental import pallas as pl
from jax.experimental.pallas import tpu as pltpu


def _round_up(v, m):
    return (v + m - 1) // m * m


def _pad_to(a, shape):
    pads = [(0, s - d) for d, s in zip(a.shape, shape)]
    return jnp.pad(a, pads)


def region_fgl_kernel(x_ref, w_ref, at_ref, ct_ref, bsum_ref, o_ref):
    """One grid point = (batch tile b, outn tile j, region k).

    x_ref   : (TN, inc_p, inn_p)  bf16 input tile (TN batch rows)
    w_ref   : (inc_p, inn_p)      bf16 per-region FGL 'weight'
    at_ref  : (inn_p, TO)         bf16 densified, degree-normalized adjacency (transposed)
    ct_ref  : (outc_p, inc_p)     bf16 channel transform (effective weight_norm Linear weight)
    bsum_ref: (outc_p, TO)        f32 bias pre-summed over regions
    o_ref   : (TN, outc_p, TO)    f32 output tile, accumulated in place over regions
    """
    k = pl.program_id(2)

    @pl.when(k == 0)
    def _init():
        o_ref[...] = jnp.zeros_like(o_ref)

    tn, inc_p, inn_p = x_ref.shape

    xw = x_ref[...] * w_ref[...]                           # (TN, inc_p, inn_p) bf16
    xw2 = xw.reshape(tn * inc_p, inn_p)                    # layout no-op (inc_p % 16 == 0)
    pre = jnp.dot(xw2, at_ref[...],
                  preferred_element_type=jnp.float32)      # (TN*inc_p, TO) f32 on MXU
    pre = pre.astype(jnp.bfloat16)

    ct = ct_ref[...]                                       # (outc_p, inc_p) bf16
    for b in range(tn):                                    # static, unrolled (TN <= 8)
        yb = jnp.dot(ct, pre[b * inc_p:(b + 1) * inc_p, :],
                     preferred_element_type=jnp.float32)   # (outc_p, TO) f32
        o_ref[b, :, :] += yb

    @pl.when(k == pl.num_programs(2) - 1)
    def _finalize():
        o_ref[...] += bsum_ref[...]                        # broadcast (outc_p, TO) over TN


def region_fgl(x, weights, a_dense_t, ct, bias, *, batch_tile=8, outn_tile=512):
    """x: (N, inc, inn); weights: (R, inc, inn); a_dense_t: (R, inn, outn);
    ct: (R, outc, inc); bias: (R, outc, outn)  ->  (N, outc, outn) float32."""
    N, inc, inn = x.shape
    R, _, outn = a_dense_t.shape
    outc = ct.shape[1]

    # Lane-dense / sublane-aligned padded sizes.
    inc_p = _round_up(inc, 16)
    outc_p = _round_up(outc, 8)
    inn_p = _round_up(inn, 128)
    outn_p = _round_up(outn, 128)

    tn = min(batch_tile, N)
    n_pad = _round_up(N, tn)
    if outn_p <= outn_tile:
        to = outn_p
    else:
        to = outn_tile
        outn_p = _round_up(outn_p, to)

    bf16 = jnp.bfloat16
    x_p = _pad_to(x, (n_pad, inc_p, inn_p)).astype(bf16)
    w_p = _pad_to(weights, (R, inc_p, inn_p)).astype(bf16)
    at_p = _pad_to(a_dense_t, (R, inn_p, outn_p)).astype(bf16)
    ct_p = _pad_to(ct, (R, outc_p, inc_p)).astype(bf16)
    bsum = _pad_to(bias.sum(axis=0), (outc_p, outn_p)).astype(jnp.float32)

    grid = (n_pad // tn, outn_p // to, R)

    y_pad = pl.pallas_call(
        region_fgl_kernel,
        out_shape=jax.ShapeDtypeStruct((n_pad, outc_p, outn_p), jnp.float32),
        grid_spec=pltpu.PrefetchScalarGridSpec(
            num_scalar_prefetch=0,
            grid=grid,
            in_specs=[
                pl.BlockSpec((tn, inc_p, inn_p), lambda b, j, k: (b, 0, 0)),
                pl.BlockSpec((None, inc_p, inn_p), lambda b, j, k: (k, 0, 0)),
                pl.BlockSpec((None, inn_p, to), lambda b, j, k: (k, 0, j)),
                pl.BlockSpec((None, outc_p, inc_p), lambda b, j, k: (k, 0, 0)),
                pl.BlockSpec((outc_p, to), lambda b, j, k: (0, j)),
            ],
            out_specs=pl.BlockSpec((tn, outc_p, to), lambda b, j, k: (b, 0, j)),
        ),
        compiler_params=pltpu.CompilerParams(
            dimension_semantics=("parallel", "parallel", "arbitrary"),
            vmem_limit_bytes=48 * 1024 * 1024,
        ),
    )(x_p, w_p, at_p, ct_p, bsum)

    return y_pad[:N, :outc, :outn]


def build_adj_lists(inn, outn, region):
    """Deterministic synthetic adjacency lists: outn lists of ints < inn, variable degree."""
    adj = []
    for o in range(outn):
        deg = 1 + (o + region) % 3
        adj.append([(o * 2 + region + 7 * d) % inn for d in range(deg)])
    return adj


def densify_normalized(adj_list, inn, outn):
    """Dense, degree-normalized adjacency (mask/(1e-8+len)) as in FGL with *_norm."""
    m = np.zeros((outn, inn), dtype=np.float32)
    for o, al in enumerate(adj_list):
        norm = 1.0 / (1e-8 + float(len(al)))
        for j in al:
            m[o, j] += norm
    return m


def build_region_params(key, inc, inn, outc, outn, dict_adj_lists):
    ws, ats, cts, bs = [], [], [], []
    for r in sorted(dict_adj_lists.keys()):
        key, k1, k2, k3 = jax.random.split(key, 4)
        # FGL.weight: sqrt(2/inn) * (-1 + 2*rand(inc, inn))
        w = np.sqrt(2.0 / inn) * (-1.0 + 2.0 * jax.random.uniform(k1, (inc, inn), jnp.float32))
        # channel_transform = weight_norm(Linear(inc, outc, bias=False)); at init the
        # effective weight equals the underlying Linear weight (outc, inc).
        bound = 1.0 / np.sqrt(inc)
        ct = jax.random.uniform(k2, (outc, inc), jnp.float32, -bound, bound)
        # bias_type 'nc': 0.2 * randn(1, outc, outn) -> stored as (outc, outn)
        b = 0.2 * jax.random.normal(k3, (outc, outn), jnp.float32)
        at = jnp.asarray(densify_normalized(dict_adj_lists[r], inn, outn)).T  # (inn, outn)
        ws.append(w); ats.append(at); cts.append(ct); bs.append(b)
    return (jnp.stack(ws), jnp.stack(ats), jnp.stack(cts), jnp.stack(bs))


def reference(x, weights, a_dense_t, ct, bias):
    """Pure-JAX f32 reference of RegionFGL(reduction='sum')."""
    xw = x[None, :, :, :] * weights[:, None, :, :]                  # (R, N, inc, inn)
    pre = jnp.einsum('rnij,rjo->rnio', xw, a_dense_t, precision='highest')
    y = jnp.einsum('rci,rnio->rnco', ct, pre, precision='highest')  # (R, N, outc, outn)
    y = y + bias[:, None, :, :]
    return y.sum(axis=0)


if __name__ == "__main__":
    N, inc, inn, outc, outn = 2, 4, 16, 8, 16
    nregions = 3

    dict_adj_lists = {r: build_adj_lists(inn, outn, r) for r in range(nregions)}

    key = jax.random.PRNGKey(0)
    key, kx, kp = jax.random.split(key, 3)
    x = jax.random.normal(kx, (N, inc, inn), jnp.float32)
    weights, a_dense_t, ct, bias = build_region_params(kp, inc, inn, outc, outn, dict_adj_lists)

    y = region_fgl(x, weights, a_dense_t, ct, bias)
    y = jax.block_until_ready(y)

    # bf16 matmul operands with f32 accumulation -> compare against the f32 reference
    # with a correspondingly relaxed tolerance.
    y_ref = reference(x, weights, a_dense_t, ct, bias)
    np.testing.assert_allclose(np.asarray(y), np.asarray(y_ref), rtol=3e-2, atol=3e-2)

    print("KERNEL_OK")
</pallas_src>

<mosaic_0001>
module attributes {stable_mosaic.version = 11 : i64} {
  func.func @region_fgl_kernel(%arg0: i32, %arg1: i32, %arg2: i32, %arg3: memref<2x16x128xbf16, #tpu.memory_space<vmem>>, %arg4: memref<1x16x128xbf16, #tpu.memory_space<vmem>>, %arg5: memref<1x128x128xbf16, #tpu.memory_space<vmem>>, %arg6: memref<1x8x16xbf16, #tpu.memory_space<vmem>>, %arg7: memref<8x128xf32, #tpu.memory_space<vmem>>, %arg8: memref<2x8x128xf32, #tpu.memory_space<vmem>>) attributes {dimension_semantics = [#tpu.dimension_semantics<parallel>, #tpu.dimension_semantics<parallel>, #tpu.dimension_semantics<arbitrary>], iteration_bounds = array<i64: 1, 1, 3>, scalar_prefetch = 0 : i64, scratch_operands = 0 : i64, tpu.core_type = #tpu.core_type<tc>, window_params = [{transform_indices = @transform_0, window_bounds = array<i64: 2, 16, 128>}, {transform_indices = @transform_1, window_bounds = array<i64: 1, 16, 128>}, {transform_indices = @transform_2, window_bounds = array<i64: 1, 128, 128>}, {transform_indices = @transform_3, window_bounds = array<i64: 1, 8, 16>}, {transform_indices = @transform_4, window_bounds = array<i64: 8, 128>}, {transform_indices = @transform_5, window_bounds = array<i64: 2, 8, 128>}]} {
    %c0_i32 = arith.constant 0 : i32
    %0 = arith.cmpi eq, %arg2, %c0_i32 : i32
    %1 = arith.extui %0 : i1 to i32
    %c0_i32_0 = arith.constant 0 : i32
    %2 = arith.cmpi ne, %1, %c0_i32_0 : i32
    scf.if %2 {
      %cst_26 = arith.constant 0.000000e+00 : f32
      %35 = vector.broadcast %cst_26 : f32 to vector<2x8x128xf32>
      %c0_27 = arith.constant 0 : index
      %c0_28 = arith.constant 0 : index
      %c0_29 = arith.constant 0 : index
      %36 = vector.load %arg8[%c0_27, %c0_28, %c0_29] : memref<2x8x128xf32, #tpu.memory_space<vmem>>, vector<2x8x128xf32>
      tpu.vector_store %arg8[%c0_27, %c0_28, %c0_29], %35 {strides = array<i32>} : memref<2x8x128xf32, #tpu.memory_space<vmem>>, vector<2x8x128xf32>,
    } else {
    }
    %c0 = arith.constant 0 : index
    %c0_1 = arith.constant 0 : index
    %c0_2 = arith.constant 0 : index
    %3 = vector.load %arg3[%c0, %c0_1, %c0_2] : memref<2x16x128xbf16, #tpu.memory_space<vmem>>, vector<2x16x128xbf16>
    %c0_3 = arith.constant 0 : index
    %c0_4 = arith.constant 0 : index
    %c0_5 = arith.constant 0 : index
    %4 = vector.load %arg4[%c0_3, %c0_4, %c0_5] : memref<1x16x128xbf16, #tpu.memory_space<vmem>>, vector<1x16x128xbf16>
    %5 = vector.shape_cast %4 : vector<1x16x128xbf16> to vector<16x128xbf16>
    %6 = vector.shape_cast %5 : vector<16x128xbf16> to vector<1x16x128xbf16>
    %7 = vector.broadcast %6 : vector<1x16x128xbf16> to vector<2x16x128xbf16>
    %8 = arith.mulf %3, %7 : vector<2x16x128xbf16>
    %9 = vector.shape_cast %8 : vector<2x16x128xbf16> to vector<32x128xbf16>
    %c0_6 = arith.constant 0 : index
    %c0_7 = arith.constant 0 : index
    %c0_8 = arith.constant 0 : index
    %10 = vector.load %arg5[%c0_6, %c0_7, %c0_8] : memref<1x128x128xbf16, #tpu.memory_space<vmem>>, vector<1x128x128xbf16>
    %11 = vector.shape_cast %10 : vector<1x128x128xbf16> to vector<128x128xbf16>
    %cst = arith.constant dense<0.000000e+00> : vector<32x128xf32>
    %12 = tpu.matmul %9, %11, %cst {dimension_numbers = #tpu.dot_dimension_numbers<[1], [0], [0], [1], [0, 0, 1, 1], [], []>} : vector<32x128xbf16>, vector<128x128xbf16>, vector<32x128xf32> -> vector<32x128xf32>
    %13 = arith.truncf %12 : vector<32x128xf32> to vector<32x128xbf16>
    %c0_9 = arith.constant 0 : index
    %c0_10 = arith.constant 0 : index
    %c0_11 = arith.constant 0 : index
    %14 = vector.load %arg6[%c0_9, %c0_10, %c0_11] : memref<1x8x16xbf16, #tpu.memory_space<vmem>>, vector<1x8x16xbf16>
    %15 = vector.shape_cast %14 : vector<1x8x16xbf16> to vector<8x16xbf16>
    %16 = vector.extract_strided_slice %13 {offsets = [0, 0], sizes = [16, 128], strides = [1, 1]} : vector<32x128xbf16> to vector<16x128xbf16>
    %cst_12 = arith.constant dense<0.000000e+00> : vector<8x128xf32>
    %17 = tpu.matmul %15, %16, %cst_12 {dimension_numbers = #tpu.dot_dimension_numbers<[1], [0], [0], [1], [0, 0, 1, 1], [], []>} : vector<8x16xbf16>, vector<16x128xbf16>, vector<8x128xf32> -> vector<8x128xf32>
    %c0_13 = arith.constant 0 : index
    %c0_14 = arith.constant 0 : index
    %c0_15 = arith.constant 0 : index
    %18 = vector.load %arg8[%c0_13, %c0_14, %c0_15] : memref<2x8x128xf32, #tpu.memory_space<vmem>>, vector<1x8x128xf32>
    %19 = vector.shape_cast %18 : vector<1x8x128xf32> to vector<8x128xf32>
    %20 = arith.addf %19, %17 : vector<8x128xf32>
    %c0_16 = arith.constant 0 : index
    %c0_17 = arith.constant 0 : index
    %c0_18 = arith.constant 0 : index
    %21 = vector.load %arg8[%c0_16, %c0_17, %c0_18] : memref<2x8x128xf32, #tpu.memory_space<vmem>>, vector<1x8x128xf32>
    %22 = vector.shape_cast %21 : vector<1x8x128xf32> to vector<8x128xf32>
    %23 = vector.shape_cast %20 : vector<8x128xf32> to vector<1x8x128xf32>
    tpu.vector_store %arg8[%c0_16, %c0_17, %c0_18], %23 {strides = array<i32>} : memref<2x8x128xf32, #tpu.memory_space<vmem>>, vector<1x8x128xf32>,
    %24 = vector.extract_strided_slice %13 {offsets = [16, 0], sizes = [16, 128], strides = [1, 1]} : vector<32x128xbf16> to vector<16x128xbf16>
    %cst_19 = arith.constant dense<0.000000e+00> : vector<8x128xf32>
    %25 = tpu.matmul %15, %24, %cst_19 {dimension_numbers = #tpu.dot_dimension_numbers<[1], [0], [0], [1], [0, 0, 1, 1], [], []>} : vector<8x16xbf16>, vector<16x128xbf16>, vector<8x128xf32> -> vector<8x128xf32>
    %c1 = arith.constant 1 : index
    %c0_20 = arith.constant 0 : index
    %c0_21 = arith.constant 0 : index
    %26 = vector.load %arg8[%c1, %c0_20, %c0_21] : memref<2x8x128xf32, #tpu.memory_space<vmem>>, vector<1x8x128xf32>
    %27 = vector.shape_cast %26 : vector<1x8x128xf32> to vector<8x128xf32>
    %28 = arith.addf %27, %25 : vector<8x128xf32>
    %c1_22 = arith.constant 1 : index
    %c0_23 = arith.constant 0 : index
    %c0_24 = arith.constant 0 : index
    %29 = vector.load %arg8[%c1_22, %c0_23, %c0_24] : memref<2x8x128xf32, #tpu.memory_space<vmem>>, vector<1x8x128xf32>
    %30 = vector.shape_cast %29 : vector<1x8x128xf32> to vector<8x128xf32>
    %31 = vector.shape_cast %28 : vector<8x128xf32> to vector<1x8x128xf32>
    tpu.vector_store %arg8[%c1_22, %c0_23, %c0_24], %31 {strides = array<i32>} : memref<2x8x128xf32, #tpu.memory_space<vmem>>, vector<1x8x128xf32>,
    %c2_i32 = arith.constant 2 : i32
    %32 = arith.cmpi eq, %arg2, %c2_i32 : i32
    %33 = arith.extui %32 : i1 to i32
    %c0_i32_25 = arith.constant 0 : i32
    %34 = arith.cmpi ne, %33, %c0_i32_25 : i32
    scf.if %34 {
      %c0_26 = arith.constant 0 : index
      %c0_27 = arith.constant 0 : index
      %c0_28 = arith.constant 0 : index
      %35 = vector.load %arg8[%c0_26, %c0_27, %c0_28] : memref<2x8x128xf32, #tpu.memory_space<vmem>>, vector<2x8x128xf32>
      %c0_29 = arith.constant 0 : index
      %c0_30 = arith.constant 0 : index
      %36 = vector.load %arg7[%c0_29, %c0_30] : memref<8x128xf32, #tpu.memory_space<vmem>>, vector<8x128xf32>
      %37 = vector.shape_cast %36 : vector<8x128xf32> to vector<1x8x128xf32>
      %38 = vector.broadcast %37 : vector<1x8x128xf32> to vector<2x8x128xf32>
      %39 = arith.addf %35, %38 : vector<2x8x128xf32>
      %c0_31 = arith.constant 0 : index
      %c0_32 = arith.constant 0 : index
      %c0_33 = arith.constant 0 : index
      %40 = vector.load %arg8[%c0_31, %c0_32, %c0_33] : memref<2x8x128xf32, #tpu.memory_space<vmem>>, vector<2x8x128xf32>
      tpu.vector_store %arg8[%c0_31, %c0_32, %c0_33], %39 {strides = array<i32>} : memref<2x8x128xf32, #tpu.memory_space<vmem>>, vector<2x8x128xf32>,
    } else {
    }
    return
  }
  func.func @transform_0(%arg0: i32, %arg1: i32, %arg2: i32) -> (i32, i32, i32) {
    %c0_i32 = arith.constant 0 : i32
    %c0_i32_0 = arith.constant 0 : i32
    %c0_i32_1 = arith.constant 0 : i32
    return %arg0, %c0_i32, %c0_i32_0 : i32, i32, i32
  }
  func.func @transform_1(%arg0: i32, %arg1: i32, %arg2: i32) -> (i32, i32, i32) {
    %c0_i32 = arith.constant 0 : i32
    %c0_i32_0 = arith.constant 0 : i32
    %c0_i32_1 = arith.constant 0 : i32
    return %arg2, %c0_i32, %c0_i32_0 : i32, i32, i32
  }
  func.func @transform_2(%arg0: i32, %arg1: i32, %arg2: i32) -> (i32, i32, i32) {
    %c0_i32 = arith.constant 0 : i32
    %c0_i32_0 = arith.constant 0 : i32
    return %arg2, %c0_i32, %arg1 : i32, i32, i32
  }
  func.func @transform_3(%arg0: i32, %arg1: i32, %arg2: i32) -> (i32, i32, i32) {
    %c0_i32 = arith.constant 0 : i32
    %c0_i32_0 = arith.constant 0 : i32
    %c0_i32_1 = arith.constant 0 : i32
    return %arg2, %c0_i32, %c0_i32_0 : i32, i32, i32
  }
  func.func @transform_4(%arg0: i32, %arg1: i32, %arg2: i32) -> (i32, i32) {
    %c0_i32 = arith.constant 0 : i32
    %c0_i32_0 = arith.constant 0 : i32
    return %c0_i32, %arg1 : i32, i32
  }
  func.func @transform_5(%arg0: i32, %arg1: i32, %arg2: i32) -> (i32, i32, i32) {
    %c0_i32 = arith.constant 0 : i32
    %c0_i32_0 = arith.constant 0 : i32
    return %arg0, %c0_i32, %arg1 : i32, i32, i32
  }
}

</mosaic_0001>

<bundles_post_ra>
// kernel: tpu_custom_call.1
= control target key start
LH: loop header
LB: loop body
LE: loop exit
PB: predicated region body
PF: predicated region fallthrough
CT: control target
= control target key end

     0   :  { %s1447_s0 = inlined_call_operand.hbm [shape: bf16[2,16,128], index: 0, kind: input, shape index: {}]   ;;  %s1448_s1 = inlined_call_operand.hbm [shape: bf16[3,16,128], index: 1, kind: input, shape index: {}]   ;;  %s1449_s2 = inlined_call_operand.hbm [shape: bf16[3,128,128], index: 2, kind: input, shape index: {}]   ;;  %s1450_s3 = inlined_call_operand.hbm [shape: bf16[3,8,16], index: 3, kind: input, shape index: {}]   ;;  %s1451_s4 = inlined_call_operand.hbm [shape: f32[8,128], index: 4, kind: input, shape index: {}]   ;;  %s1452_s5 = inlined_call_operand.hbm [shape: f32[2,8,128], index: 5, kind: output, shape index: {}]  }
   0x1   :  { %1456 = sst [smem:[#allocation18_spill]] %s1447_s0 }
   0x2   :  { %1457 = sst [smem:[#allocation19_spill]] %s1448_s1 }
   0x3   :  { %1458 = sst [smem:[#allocation20_spill]] %s1451_s4 }
   0x4   :  { %10 = vsyncpa [#allocation3], 0 }
   0x5   :  { %11 = vsyncpa [#allocation6], 0 }
   0x6   :  { %13 = vsyncpa [#allocation6 + $0x1], 0 }
   0x7   :  { %14 = vsyncpa [#allocation9], 0 }
   0x8   :  { %16 = vsyncpa [#allocation9 + $0x1], 0 }
   0x9   :  { %17 = vsyncpa [#allocation4], 0  ;;  %s1239_s18 = smov 0   ;;  %s1241_s19 = smov 0  }
   0xa   :  { %s1243_s20 = smov 0   ;;  %s1245_s21 = smov 0  }
   0xb   :  { %s1247_s22 = smov 0   ;;  %s1249_s23 = smov 0  }
   0xc LB: > { %s1268_s24 = sadd.s32 4294967295, %s1194_s23   ;;  %s75_s25 = sadd.s32 1, %s1182_s20  ;;  %s1194_s23 = sphi %s1249_s23, %s23_s23   ;;  %s1190_s22 = sphi %s1247_s22, %s1477_s22   ;;  %s1186_s21 = sphi %s1245_s21, %s1476_s21   ;;  %s1182_s20 = sphi %s1243_s20, %s1475_s20   ;;  %s1178_s19 = sphi %s1241_s19, %s1474_s19   ;;  %s1174_s18 = sphi %s1239_s18, %s1473_s18  }
   0xd   : > { %p82_p0 = scmp.ne.s32.totalorder %s1182_s20, %s1178_s19  ;;  %p83_p1 = scmp.eq.s32.totalorder %s1194_s23, 0 }
   0xe   : > { %p88_p2 = scmp.ne.s32.totalorder %s1178_s19, %s1174_s18  ;;  %p1453_p3 = scmp.eq.s32.totalorder %s1268_s24, 0 }
   0xf   : > { %p84_p4 = por %p83_p1, %p82_p0  ;;  %p776_p5 = scmp.ge.s32.totalorder %s1194_s23, 1 }
  0x10   : > { %p1279_p6 = por %p1453_p3, %p88_p2  ;;  %p207_p7 = scmp.lt.s32.totalorder %s1194_s23, 4 }
  0x11   : > { %s1196_s28 = smov [#allocation10]   ;;  %p897_p10 = scmp.lt.s32.totalorder %s1194_s23, 3 }
  0x12   : > { %p1284_p8 = pnand %p776_p5, %p207_p7  ;;  %s239_s29 = sshll.u32 %s1196_s28, 4  ;;  %s240_s29 = int_to_ptr.vmem [resolvable:$true] %s239_s29 }
  0x13   : > { %p1297_p12 = pnand %p897_p10, %p84_p4  ;;  %s979_s7 = scalar_lea.vmem %s240_s29, 128 }
  0x14   : > { %p878_p9 = pneg %p1284_p8  ;;  %p980_p0 = scmp.ne.s32.totalorder %s240_s29, %s979_s7 }
  0x15   : > { %p987_p5 = scmp.lt.s32.totalorder %s240_s29, %s240_s29  ;;  %p988_p7 = scmp.lt.s32.totalorder %s979_s7, %s979_s7 }
  0x16   : > { %p1293_p11 = pnand %p878_p9, %p1453_p3 }
  0x17   : > { %p989_p9 = por %p988_p7, %p987_p5 }
  0x18   : > { %p970_p13 = pneg %p1293_p11 }
  0x1a   : > { %p982_p1 = pnand %p980_p0, %p970_p13 }
  0x1c   : > { %p983_p2 = pneg %p982_p1 }
  0x1e   : > { %p990_p3 = pnand %p989_p9, %p983_p2 }
  0x20   : > { %993 = shalt.err (!%p990_p3)
}
  0x21   : > { %s1463_s4 = sld [smem:[#allocation20_spill]]  ;;  %s35_s10 = sadd.s32 1, %s1190_s22 }
  0x22   : > { %s1454_s11 = sand.u32 1, %s1194_s23   ;;  %p36_p4 = scmp.ge.s32.totalorder %s35_s10, 3 }
  0x23   : > { %s1314_s12 = sand.u32 1, %s1182_s20   ;;  %s812_s13 = sshll.u32 %s1190_s22, 7 }
  0x24   : > { %s1479_s10 = smov (%p36_p4, %s35_s10), 0  ;;  %s780_s14 = sshll.u32 %s1314_s12, 3 }
  0x25   : > { %1464 = sst [smem:[#allocation17_spill]] %s1479_s10  ;;  %s72_s18 = ssub.s32 %s1190_s22, %s1479_s10 }
  0x26   : > { %s1465_s1 = sld [smem:[#allocation19_spill]]  ;;  %p73_p3 = scmp.eq.s32.totalorder %s72_s18, 0 }
  0x27   : > { %884 = dma.hbm_to_vmem [thread:$0]  (!%p1293_p11), %s1463_s4, 128, %s240_s29, [#allocation9]  }
  0x28   : > { %s254_s28 = scalar_lea.vmem [#allocation5], %s780_s14  ;;  %s1332_s8 = scalar_lea.sflag [#allocation6], %s1454_s11 }
  0x29   : > { %s261_s29 = sshll.u32 %s254_s28, 4  ;;  %p996_p10 = pneg %p1297_p12  ;;  %s262_s29 = int_to_ptr.vmem [resolvable:$true] %s261_s29 }
  0x2a   : > { %s1328_s7 = scalar_select %p73_p3, %s1182_s20, %s75_s25  }
  0x2b   : > { %s1007_s9 = scalar_lea.vmem %s262_s29, 128 }
  0x2c   : > { %s260_s17 = scalar_lea.hbm %s1465_s1, %s812_s13  ;;  %p1008_p0 = scmp.ne.s32.totalorder %s262_s29, %s1007_s9 }
  0x2d   : > { %s1197_s13 = smov [#allocation5]  }
  0x2e   : > { %p1010_p1 = pnand %p1008_p0, %p996_p10  ;;  %s1012_s15 = sshll.u32 %s1197_s13, 4  ;;  %s1013_s15 = int_to_ptr.vmem [resolvable:$false] %s1012_s15 }
  0x2f   : > { %s1014_s14 = scalar_lea.vmem %s1013_s15, 256  ;;  %p1015_p5 = scmp.lt.s32.totalorder %s262_s29, %s1013_s15 }
  0x30   : > { %p1011_p2 = pneg %p1010_p1  ;;  %p1016_p7 = scmp.lt.s32.totalorder %s1014_s14, %s1007_s9 }
  0x32   : > { %p1017_p9 = por %p1016_p7, %p1015_p5 }
  0x34   : > { %p1018_p4 = pnand %p1017_p9, %p1011_p2 }
  0x36   : > { %1021 = shalt.err (!%p1018_p4)
}
  0x37   : > { %s1198_s25 = smov 64   ;;  %s1199_s16 = smov 4  }
  0x38   : > { %888 = dma.hbm_to_vmem [thread:$0]  (!%p1297_p12), %s260_s17, 128, %s262_s29, %s1332_s8, %s1198_s25, %s1198_s25, %s1199_s16  }
  0x39   : > { %s1200_s18 = smov [#allocation2]   ;;  %s783_s13 = sshll.u32 %s1314_s12, 6 }
  0x3a   : > { %s223_s28 = sshll.u32 %s1200_s18, 4  ;;  %s224_s28 = int_to_ptr.vmem [resolvable:$true] %s223_s28 }
  0x3b   : > { %s1033_s15 = scalar_lea.vmem %s224_s28, 256  ;;  %p1041_p2 = scmp.lt.s32.totalorder %s224_s28, %s224_s28 }
  0x3c   : > { %p1034_p3 = scmp.ne.s32.totalorder %s224_s28, %s1033_s15  ;;  %p1042_p5 = scmp.lt.s32.totalorder %s1033_s15, %s1033_s15 }
  0x3e   : > { %p1036_p0 = pnand %p1034_p3, %p970_p13  ;;  %p1043_p7 = por %p1042_p5, %p1041_p2 }
  0x40   : > { %p1037_p1 = pneg %p1036_p0 }
  0x42   : > { %p1044_p9 = pnand %p1043_p7, %p1037_p1 }
  0x44   : > { %1047 = shalt.err (!%p1044_p9)
}
  0x45   : > { %s1466_s0 = sld [smem:[#allocation18_spill]]  ;;  %s813_s9 = sshll.u32 %s1190_s22, 10 }
  0x46   : > { %s275_s14 = scalar_lea.vmem [#allocation7], %s783_s13  ;;  %s282_s15 = scalar_lea.hbm %s1449_s2, %s813_s9 }
  0x47   : > { %s283_s18 = sshll.u32 %s275_s14, 4  ;;  %s1201_s30 = smov [#allocation7]   ;;  %s284_s18 = int_to_ptr.vmem [resolvable:$true] %s283_s18 }
  0x48   : > { %s1061_s4 = scalar_lea.vmem %s284_s18, 1024  ;;  %s1066_s10 = sshll.u32 %s1201_s30, 4  ;;  %s1067_s10 = int_to_ptr.vmem [resolvable:$false] %s1066_s10 }
  0x49   : > { %p1062_p13 = scmp.ne.s32.totalorder %s284_s18, %s1061_s4  ;;  %s1068_s17 = scalar_lea.vmem %s1067_s10, 2048 }
  0x4a   : > { %p1069_p0 = scmp.lt.s32.totalorder %s284_s18, %s1067_s10 }
  0x4b   : > { %881 = dma.hbm_to_vmem [thread:$0]  (!%p1293_p11), %s1466_s0, 256, %s224_s28, [#allocation3], %s1198_s25, %s1198_s25, %s1199_s16  }
  0x4c   : > { %p1064_p4 = pnand %p1062_p13, %p996_p10  ;;  %p1070_p11 = scmp.lt.s32.totalorder %s1068_s17, %s1061_s4 }
  0x4e   : > { %p1065_p3 = pneg %p1064_p4  ;;  %p1071_p1 = por %p1070_p11, %p1069_p0 }
  0x50   : > { %p1072_p2 = pnand %p1071_p1, %p1065_p3 }
  0x52   : > { %1075 = shalt.err (!%p1072_p2)
}
  0x53   : > { %891 = dma.hbm_to_vmem [thread:$0]  (!%p1297_p12), %s282_s15, 1024, %s284_s18, %s1332_s8, %s1198_s25, %s1198_s25, %s1199_s16  }
  0x54   : > { %s786_s1 = sshll.u32 %s1314_s12, 2  ;;  %s787_s11 = sshll.u32 %s1190_s22, 6 }
  0x55   : > { %s302_s4 = scalar_lea.hbm %s1450_s3, %s787_s11  ;;  %s297_s10 = scalar_lea.vmem [#allocation8], %s786_s1 }
  0x56   : > { %s304_s29 = sshll.u32 %s297_s10, 4  ;;  %s1467_s9 = sand.u32 1, %s1194_s23   ;;  %s305_s29 = int_to_ptr.vmem [resolvable:$true] %s304_s29 }
  0x57   : > { %s294_s14 = scalar_lea.sflag [#allocation9], %s1467_s9  ;;  %s1089_s30 = scalar_lea.vmem %s305_s29, 64 }
  0x58   : > { %p1090_p5 = scmp.ne.s32.totalorder %s305_s29, %s1089_s30  ;;  %s1202_s17 = smov [#allocation8]  }
  0x59   : > { %s1094_s0 = sshll.u32 %s1202_s17, 4  ;;  %s1095_s0 = int_to_ptr.vmem [resolvable:$false] %s1094_s0 }
  0x5a   : > { %p1092_p7 = pnand %p1090_p5, %p996_p10  ;;  %s1096_s12 = scalar_lea.vmem %s1095_s0, 128 }
  0x5b   : > { %p1097_p13 = scmp.lt.s32.totalorder %s305_s29, %s1095_s0  ;;  %p1098_p4 = scmp.lt.s32.totalorder %s1096_s12, %s1089_s30 }
  0x5c   : > { %p1093_p9 = pneg %p1092_p7 }
  0x5d   : > { %p1099_p3 = por %p1098_p4, %p1097_p13 }
  0x5f   : > { %p1100_p0 = pnand %p1099_p3, %p1093_p9 }
  0x61   : > { %1103 = shalt.err (!%p1100_p0)
}
  0x62   : > { %894 = dma.hbm_to_vmem [thread:$0]  (!%p1297_p12), %s302_s4, 64, %s305_s29, %s294_s14  }
  0x63   : > { %313 = sbr.rel (%p1284_p8) target bundleno = 592 (0x250), region = 40  ;;  %p1468_p11 = scmp.eq.s32.totalorder (!%p1284_p8), %s1268_s24, 0 }
  0x68   : > { %1153 = dma.done.wait (%p1468_p11), [#allocation3], 256   ;;  %p1469_p10 = pmov %p1468_p11 }
  0x69   : > { %s319_s0 = sand.u32 1, %s1268_s24   ;;  %s321_s8 = sand.u32 1, %s1178_s19  }
  0x6a   : > { %1155 = vsyncadd (%p1469_p10), [#allocation3], 4294967040  ;;  %s790_s25 = sshll.u32 %s321_s8, 3  ;;  %s320_s16 = scalar_lea.sflag [#allocation6], %s319_s0 }
  0x6b   : > { %s323_s18 = scalar_lea.vmem [#allocation5], %s790_s25 }
  0x6c   : > { %1157 = dma.done.wait (%p1279_p6), %s320_s16, 1152  }
  0x6d   : > { %1159 = vsyncadd (%p1279_p6), %s320_s16, 4294966144  ;;  %s791_s27 = sshll.u32 %s321_s8, 6  ;;  %s792_s6 = sshll.u32 %s321_s8, 2 }
  0x6e   : > { %s1394_s15 = scalar_lea.vmem [#allocation7], %s791_s27  ;;  %s338_s1 = scalar_lea.sflag [#allocation9], %s319_s0 }
  0x6f   : > { %s1396_s11 = scalar_lea.vmem [#allocation8], %s792_s6 }
  0x70   : > { %1161 = dma.done.wait (%p1279_p6), %s338_s1, 64  }
  0x71   : > { %1163 = vsyncadd (%p1279_p6), %s338_s1, 4294967232  ;;  %p1470_p8 = pmov %p1469_p10 }
  0x73   : > { %1165 = dma.done.wait (%p1470_p8), [#allocation9], 128   ;;  %p1471_p12 = pmov %p1470_p8 }
  0x74   : > { %p794_p1 = scmp.ne.s32.totalorder %s1186_s21, 0 }
  0x75   : > { %1167 = vsyncadd (%p1471_p12), [#allocation9], 4294967168 }
  0x76   : > { %383 = sbr.rel (%p794_p1) target bundleno = 125 (0x7d), region = 64 }
  0x7b   : > { %v1203_v0 = vmov 0.0  }
  0x7c   : > { %384 = vst [vmem:[#allocation11] sm:$0xff] %v1203_v0  ;;  %385 = vst [vmem:[#allocation11 + $0x8] sm:$0xff] %v1203_v0 }
  0x7d PF: > { %v960_v1 = vld [vmem:[%s1394_s15 + $0x38] sm:$0xff]   ;;  %v961_v2 = vld [vmem:[%s1394_s15 + $0x30] sm:$0xff]   ;;  %v962_v3 = vld [vmem:[%s1394_s15 + $0x28] sm:$0xff]   ;;  %v1204_v21 = vmov 0.0   ;;  %vm1205_vm0 = vmmov 0   ;;  %vm524_vm1 = vcmask 130048  }
  0x7e   : > { %828 = vmatprep.subr.bf16.mxu0 %v960_v1  ;;  %v963_v4 = vld [vmem:[%s1394_s15 + $0x20] sm:$0xff]   ;;  %v390_v7 = vld [vmem:[%s323_s18] sm:$0xf]  ;;  %v391_v8 = vld [vmem:[%s323_s18 + $0x4] sm:$0xf]  ;;  %848 = vmatprep.subr.bf16.mxu1 %v1204_v21  ;;  %p807_p6 = scmp.ne.s32.totalorder %s1186_s21, 2 }
  0x7f   : > { %829 = vmatpush3.bf16.msra.mxu0 %v960_v1  ;;  %v386_v5 = vld [vmem:[#allocation2] sm:$0xf]  ;;  %v387_v6 = vld [vmem:[#allocation2 + $0x4] sm:$0xf]  ;;  %v964_v11 = vld [vmem:[%s1394_s15 + $0x18] sm:$0xff]   ;;  %850 = vmatprep.mubr.msk.bf16.mxu1 %vm1205_vm0, %v1204_v21 }
  0x80   : > { %830 = vmatprep.subr.bf16.mxu0 %v961_v2  ;;  %v392_v9 = vmul.bf16 %v390_v7, %v386_v5  ;;  %v393_v10 = vmul.bf16 %v391_v8, %v387_v6  ;;  %v965_v13 = vld [vmem:[%s1394_s15 + $0x10] sm:$0xff]   ;;  %v966_v14 = vld [vmem:[%s1394_s15 + $0x8] sm:$0xff]   ;;  %v967_v17 = vld [vmem:[%s1394_s15] sm:$0xff]  }
  0x81   : > { %v388_v15 = vld [vmem:[#allocation2 + $0x8] sm:$0xf]  ;;  %v389_v16 = vld [vmem:[#allocation2 + $0xc] sm:$0xf]  ;;  %v523_v27 = vld [vmem:[%s1396_s11] sm:$0xf] }
  0x82   : > { %v795_v12 = vcombine.low %v392_v9, %v393_v10  ;;  %v394_v18 = vmul.bf16 %v390_v7, %v388_v15  ;;  %v395_v19 = vmul.bf16 %v391_v8, %v389_v16 }
  0x83   : > { %831 = vmatpush3.bf16.msra.mxu0 %v961_v2  ;;  %v568_v29 = vld [vmem:[#allocation11] sm:$0xff]  ;;  %v612_v35 = vld [vmem:[#allocation11 + $0x8] sm:$0xff] }
  0x84   : > { %832 = vmatprep.subr.bf16.mxu0 %v962_v3  ;;  %844 = vmatprep.mubr.bf16.mxu0 %v795_v12  ;;  %v796_v20 = vcombine.low %v394_v18, %v395_v19 }
  0x87   : > { %833 = vmatpush3.bf16.msra.mxu0 %v962_v3 }
  0x88   : > { %834 = vmatprep.subr.bf16.mxu0 %v963_v4 }
  0x8b   : > { %835 = vmatpush3.bf16.msra.mxu0 %v963_v4 }
  0x8c   : > { %836 = vmatprep.subr.bf16.mxu0 %v964_v11 }
  0x8f   : > { %837 = vmatpush3.bf16.msra.mxu0 %v964_v11 }
  0x90   : > { %838 = vmatprep.subr.bf16.mxu0 %v965_v13 }
  0x93   : > { %839 = vmatpush3.bf16.msra.mxu0 %v965_v13 }
  0x94   : > { %840 = vmatprep.subr.bf16.mxu0 %v966_v14 }
  0x97   : > { %841 = vmatpush3.bf16.msra.mxu0 %v966_v14 }
  0x98   : > { %842 = vmatprep.subr.bf16.mxu0 %v967_v17 }
  0x9b   : > { %843 = vmatpush3.bf16.msra.mxu0 %v967_v17 }
  0x9e   : > { %845 = vmatmul.mubr.bf16.vlgmr.msra.gmra.mxu0 %v796_v20 }
 0x15e   : > { %v846_v22 = vpop.f32.mrf.mxu0 }
 0x160   : > { %v506_v23 = vpop.f32.mrf.mxu0 }
 0x162   : > { %v847_v24 = vpop.f32.mrf.mxu0 }
 0x163   : > { %v522_v28 = vpack.c.bf16 %v847_v24, %v846_v22 }
 0x164   : > { %v509_v25 = vpop.f32.mrf.mxu0 }
 0x165   : > { %v521_v26 = vpack.c.bf16 %v509_v25, %v506_v23 }
 0x167   : > { %849 = vmatpush3.bf16.msra.mxu1 %v521_v26 }
 0x168   : > { %854 = vmatprep.subr.bf16.mxu1 %v1204_v21 }
 0x16a   : > { %851 = vmatmul.mubr.msk.bf16.vlgmr.msra.gmra.mxu1 %vm524_vm1, %v523_v27 }
 0x16b   : > { %855 = vmatpush3.bf16.msra.mxu1 %v522_v28  ;;  %856 = vmatprep.mubr.msk.bf16.mxu1 %vm1205_vm0, %v1204_v21 }
 0x172   : > { %857 = vmatmul.mubr.msk.bf16.vlgmr.msra.gmra.mxu1 %vm524_vm1, %v523_v27 }
 0x22a   : > { %v562_v30 = vpop.f32.mrf.mxu1 }
 0x22b   : > { %v569_v31 = vadd.f32 %v568_v29, %v562_v30 }
 0x22c   : > { %v852_v32 = vpop.f32.mrf.mxu1 }
 0x22d   : > { %570 = vst [vmem:[#allocation11] sm:$0xff] %v569_v31 }
 0x22e   : > { %v565_v33 = vpop.f32.mrf.mxu1 }
 0x230   : > { %v853_v34 = vpop.f32.mrf.mxu1 }
 0x232   : > { %v605_v36 = vpop.f32.mrf.mxu1 }
 0x233   : > { %v613_v37 = vadd.f32 %v612_v35, %v605_v36 }
 0x234   : > { %v858_v38 = vpop.f32.mrf.mxu1  ;;  %618 = sbr.rel (%p807_p6) target bundleno = 576 (0x240), region = 68 }
 0x235   : > { %614 = vst [vmem:[#allocation11 + $0x8] sm:$0xff] %v613_v37 }
 0x236   : > { %v608_v39 = vpop.f32.mrf.mxu1 }
 0x238   : > { %v859_v40 = vpop.f32.mrf.mxu1 }
 0x239   : > { %v619_v41 = vld [vmem:[#allocation11] sm:$0xff]  ;;  %v621_v42 = vld [vmem:[#allocation10] sm:$0xff] }
 0x23a   : > { %v622_v44 = vadd.f32 %v621_v42, %v619_v41 }
 0x23c   : > { %v620_v43 = vld [vmem:[#allocation11 + $0x8] sm:$0xff]  ;;  %624 = vst [vmem:[#allocation11] sm:$0xff] %v622_v44 }
 0x23d   : > { %v623_v45 = vadd.f32 %v621_v42, %v620_v43 }
 0x23f   : > { %625 = vst [vmem:[#allocation11 + $0x8] sm:$0xff] %v623_v45 }
 0x240 PF: > { %p900_p2 = scmp.eq.s32.totalorder %s1268_s24, 2  ;;  %s1206_s26 = smov [#allocation11]  }
 0x241   : > { %s636_s28 = sshll.u32 %s1206_s26, 4  ;;  %s637_s28 = int_to_ptr.vmem [resolvable:$true] %s636_s28 }
 0x242   : > { %s1104_s13 = scalar_lea.vmem %s637_s28, 256  ;;  %p1111_p13 = scmp.lt.s32.totalorder %s637_s28, %s637_s28 }
 0x243   : > { %p1105_p5 = scmp.ne.s32.totalorder %s637_s28, %s1104_s13  ;;  %p1112_p4 = scmp.lt.s32.totalorder %s1104_s13, %s1104_s13 }
 0x245   : > { %p1106_p7 = pnand %p1105_p5, %p900_p2  ;;  %p1113_p3 = por %p1112_p4, %p1111_p13 }
 0x247   : > { %p1107_p9 = pneg %p1106_p7 }
 0x249   : > { %p1114_p0 = pnand %p1113_p3, %p1107_p9 }
 0x24b   : > { %1117 = shalt.err (!%p1114_p0)
}
 0x24c   : > { %s1207_s21 = smov 128   ;;  %s1208_s4 = smov 8  }
 0x24d   : > { %875 = dma.vmem_to_hbm [thread:$0]  (%p900_p2), %s637_s28, 256, %s1452_s5, [#allocation4], %s1207_s21, %s1207_s21, %s1208_s4  }
 0x24e   : > { %1169 = dma.done.wait (%p900_p2), [#allocation4], 256  }
 0x24f   : > { %1171 = vsyncadd (%p900_p2), [#allocation4], 4294967040 }
 0x250 PF: > { %s23_s23 = sadd.s32 1, %s1194_s23   ;;  %s1472_s9 = sld [smem:[#allocation17_spill]] }
 0x251   : > { %p20_p11 = scmp.ge.s32.totalorder %s23_s23, 5   ;;  %s1473_s18 = smov %s1178_s19 }
 0x252   : > { %s1474_s19 = smov %s1182_s20  ;;  %s1475_s20 = smov %s1328_s7 }
 0x253   : > { %s1476_s21 = smov %s1190_s22  ;;  %22 = sbr.rel (!%p20_p11) target bundleno = 12 (0xc), region = 122 }
 0x256   : > { %s1477_s22 = smov %s1472_s9 }
 0x258   :  { %652 = vsyncpa [#allocation3], 1 }
 0x259   :  { %654 = vsyncpa [#allocation3 + $0x1], 1 }
 0x25a   :  { %655 = vsyncpa [#allocation6], 1 }
 0x25b   :  { %657 = vsyncpa [#allocation6 + $0x1], 1 }
 0x25c   :  { %658 = vsyncpa [#allocation9], 1 }
 0x25d   :  { %660 = vsyncpa [#allocation9 + $0x1], 1 }
 0x25e   :  { %661 = vsyncpa [#allocation4], 1 }
 0x25f   :  { %663 = vsyncpa [#allocation4 + $0x1], 1 }

</bundles_post_ra>
